<compile_context>
chip_gen: v7x
topology: tpu7x:2x2x1
jax: 0.10.0
libtpu: 0.0.40
codegen_flags: <defaults>
</compile_context>

<pallas_src>
import functools
import math

import numpy as np
import jax
import jax.numpy as jnp
from jax.experimental import pallas as pl
from jax.experimental.pallas import tpu as pltpu


# --------------------------------------------------------------------------------------
# numpy glue: steerable-pyramid filter construction (identical formulas to pyiqa)
# --------------------------------------------------------------------------------------
def _prepare_grid(m, n):
    x = np.linspace(-(m // 2) / (m / 2), (m // 2) / (m / 2) - (1 - m % 2) * 2 / m, num=m)
    y = np.linspace(-(n // 2) / (n / 2), (n // 2) / (n / 2) - (1 - n % 2) * 2 / n, num=n)
    xv, yv = np.meshgrid(y, x)
    angle = np.arctan2(yv, xv)
    rad = np.sqrt(xv ** 2 + yv ** 2)
    rad[m // 2][n // 2] = rad[m // 2][n // 2 - 1]
    log_rad = np.log2(rad)
    return log_rad, angle


def _rcos_fn(width=1, position=0):
    N = 256
    X = np.pi * np.arange(-N - 1, 2) / 2 / N
    Y = np.cos(X) ** 2
    Y[0] = Y[1]
    Y[N + 2] = Y[N + 1]
    X = position + 2 * width / np.pi * (X + np.pi / 4)
    return X, Y


def _point_op(im, Y, X):
    out = np.interp(im.flatten(), X, Y)
    return np.reshape(out, im.shape)


def _fspecial_gauss(size, sigma):
    size = np.asarray(size).astype(int)
    m, n = [(ss - 1.0) / 2.0 for ss in size]
    y, x = np.ogrid[-m:m + 1, -n:n + 1]
    h = np.exp(-(x * x + y * y) / (2.0 * sigma * sigma))
    h[h < np.finfo(h.dtype).eps * h.max()] = 0
    sumh = h.sum()
    if sumh != 0:
        h /= sumh
    return h.astype(np.float32)


# --------------------------------------------------------------------------------------
# Complex steerable pyramid (SCFpyr) — only the level-th orientation band list is needed
# by CW-SSIM, so only that level is materialised.
# TODO(synk): the FFT-based pyramid decomposition has no Pallas equivalent (no FFT
# primitive on the TensorCore); it stays in plain JAX (jnp.fft), with all ORI inverse
# FFTs done as a single batched ifft2.
# --------------------------------------------------------------------------------------
def _scf_pyramid_last_band(im, level, nbands):
    """im: (N, H, W) float32 -> (real, imag), each (nbands, N, h, w) float32."""
    N, H, W = im.shape
    assert level <= int(np.floor(np.log2(min(H, W))) - 2), "image too small for this level"

    log_rad, angle = _prepare_grid(H, W)
    Xrcos, Yrcos = _rcos_fn(1, -0.5)
    Yrcos = np.sqrt(Yrcos)
    YIrcos = np.sqrt(1.0 - Yrcos ** 2)
    lo0mask = _point_op(log_rad, YIrcos, Xrcos)

    dft = jnp.fft.fftshift(jnp.fft.fft2(im), axes=(-2, -1))
    lodft = dft * jnp.asarray(lo0mask, dtype=jnp.float32)[None]

    # (level-1) low-pass + frequency-domain subsample steps
    for _ in range(level - 1):
        Xrcos = Xrcos - np.log2(2)
        dims = np.array(lodft.shape[1:3])
        lo_start = (np.ceil((dims + 0.5) / 2)
                    - np.ceil((np.ceil((dims - 0.5) / 2) + 0.5) / 2)).astype(int)
        lo_end = (lo_start + np.ceil((dims - 0.5) / 2)).astype(int)
        log_rad = log_rad[lo_start[0]:lo_end[0], lo_start[1]:lo_end[1]]
        angle = angle[lo_start[0]:lo_end[0], lo_start[1]:lo_end[1]]
        lodft = lodft[:, lo_start[0]:lo_end[0], lo_start[1]:lo_end[1]]
        YIrcos = np.abs(np.sqrt(1.0 - Yrcos ** 2))
        lomask = _point_op(log_rad, YIrcos, Xrcos)
        lodft = lodft * jnp.asarray(lomask, dtype=jnp.float32)[None]

    # orientation band-pass at the requested level
    Xrcos = Xrcos - np.log2(2)
    himask = _point_op(log_rad, Yrcos, Xrcos)

    lutsize = 1024
    Xcosn = np.pi * np.arange(-(2 * lutsize + 1), lutsize + 2) / lutsize
    alpha = (Xcosn + np.pi) % (2 * np.pi) - np.pi
    order = nbands - 1
    const = (2.0 ** (2 * order)) * (math.factorial(order) ** 2) / (nbands * math.factorial(2 * order))
    Ycosn = 2.0 * np.sqrt(const) * (np.cos(Xcosn) ** order) * (np.abs(alpha) < np.pi / 2)
    cfact = np.power(complex(0, -1), nbands - 1)  # (-i)^(nbands-1)

    # all orientation masks as one numpy stack -> single batched complex multiply + ifft2
    masks = np.stack(
        [_point_op(angle, Ycosn, Xcosn + np.pi * b / nbands) * himask for b in range(nbands)],
        axis=0).astype(np.float32)                                      # (ORI, h, w)

    banddft = lodft[None, :, :, :] * jnp.asarray(masks)[:, None, :, :]  # (ORI, N, h, w)
    banddft = banddft * jnp.complex64(cfact)
    band = jnp.fft.ifft2(jnp.fft.ifftshift(banddft, axes=(-2, -1)))     # batched over (ORI, N)
    return jnp.real(band).astype(jnp.float32), jnp.imag(band).astype(jnp.float32)


# --------------------------------------------------------------------------------------
# Pallas kernel: CW-SSIM hot path for Nb images x ORI orientations, lane-packed.
#   corr = band1 * conj(band2); 7x7 box conv (win7 = ones/49) on corr_r, corr_i, varr
#   done as ONE fused banded matmul pair on the MXU; cssim = (2*|corr_b| + K)/(varr_b + K);
#   gaussian-weighted spatial sum folded into a multiply + segmented-sum matmul.
# --------------------------------------------------------------------------------------
def _cw_ssim_kernel(bands_ref, lmat3_ref, rmat_ref, wfull_ref, smat_ref, out_ref, *, K):
    x = bands_ref[0]                       # (4*H, L) one lane-dense slab, one DMA per step
    H = x.shape[0] // 4
    x1r = x[0 * H:1 * H]
    x1i = x[1 * H:2 * H]
    x2r = x[2 * H:3 * H]
    x2i = x[3 * H:4 * H]

    # band1 * conj(band2) and |band1|^2 + |band2|^2   (VPU elementwise)
    cr = x1r * x2r + x1i * x2i             # Re{b1 * conj(b2)}
    ci = x1i * x2r - x1r * x2i             # Im{b1 * conj(b2)}
    vb = x1r * x1r + x1i * x1i + x2r * x2r + x2i * x2i

    # fused 7x7 box filter of all three planes: a single banded matmul pair (MXU)
    stacked = jnp.concatenate([cr, ci, vb], axis=0)                            # (3H, L)
    t = jnp.dot(lmat3_ref[...], stacked, preferred_element_type=jnp.float32)   # (3Ho, L)
    filt = jnp.dot(t, rmat_ref[...], preferred_element_type=jnp.float32)       # (3Ho, Lout)

    Ho = filt.shape[0] // 3
    crb = filt[0 * Ho:1 * Ho]
    cib = filt[1 * Ho:2 * Ho]
    vbb = filt[2 * Ho:3 * Ho]

    # win7 = ones/49: the 1/49 is hoisted out of the exact-0/1 band matrices.
    inv49 = jnp.float32(1.0 / 49.0)
    mag = jnp.sqrt(crb * crb + cib * cib) * inv49
    den = vbb * inv49 + K
    cssim = (2.0 * mag + K) / den          # exact division (matches the reference; K may be 0)

    weighted = cssim * wfull_ref[...]      # gaussian window tiled over (image, orientation)
    col = jnp.sum(weighted, axis=0, keepdims=True)                             # (1, Lout)
    # segmented lane-sum over each (image, orientation) block of Wo lanes, padded to a
    # lane-dense 128-wide output row (unmasked store).
    out_ref[...] = jnp.dot(col, smat_ref[...],
                           preferred_element_type=jnp.float32)[None]           # (1, 1, OUT_LANES)


def _cw_ssim_bands_pallas(b1r, b1i, b2r, b2i, wgt, K):
    ORI, N, H, W = b1r.shape
    Ho, Wo = wgt.shape
    assert (Ho, Wo) == (H - 6, W - 6), "gaussian window / band size mismatch"

    lanes_per_image = ORI * W
    # Grid sizing: 2 steps only when the batch splits evenly AND each step still has a
    # >=128-lane slab (so v7x's two TensorCores both get real work); otherwise a single
    # step — on v5e/v6e (one TC) tiny grids are dominated by the ~600-cycle per-step
    # overhead and per-step DMA issue cost.
    if N % 2 == 0 and (N // 2) * lanes_per_image >= 128:
        num_steps = 2
    else:
        num_steps = 1
    Nb = N // num_steps
    L = Nb * ORI * W            # lane width of the packed band slab
    Lout = Nb * ORI * Wo        # lane width after the box filter
    NO = Nb * ORI               # (image, orientation) blocks per step
    OUT_LANES = max(128, ((NO + 127) // 128) * 128)

    # lane-dense packing (wrapper-side layout plumbing):
    #   (ORI, N, H, W) -> (steps, H, Nb*ORI*W), lane index = (img_local*ORI + ori)*W + w
    def pack(v):
        v = jnp.transpose(v, (1, 2, 0, 3))           # (N, H, ORI, W)
        v = v.reshape(num_steps, Nb, H, ORI, W)
        v = jnp.transpose(v, (0, 2, 1, 3, 4))        # (steps, H, Nb, ORI, W)
        return v.reshape(num_steps, H, L)

    # all four band components in ONE array -> one input DMA (+ one wait) per grid step
    bands = jnp.concatenate([pack(b1r), pack(b1i), pack(b2r), pack(b2i)], axis=1)  # (steps, 4H, L)

    # static banded filter / reduction matrices (exact 0/1; deterministic, numpy)
    lmat = np.zeros((Ho, H), np.float32)
    for i in range(Ho):
        lmat[i, i:i + 7] = 1.0
    lmat3 = np.kron(np.eye(3, dtype=np.float32), lmat)                 # (3Ho, 3H) fused filter
    rcol = np.zeros((W, Wo), np.float32)
    for j in range(Wo):
        rcol[j:j + 7, j] = 1.0
    # NOTE: rmat is dense block-diagonal over (image, orientation) blocks — tiny at
    # level=4.  For low pyramid levels / large bands it should be tiled per orientation
    # (extra grid axis keeping only rcol) and the constant specs single-buffered
    # (pipeline_mode=pl.Buffered(1)) to stay inside v7x's 64 MiB VMEM.
    rmat = np.kron(np.eye(NO, dtype=np.float32), rcol)                 # (L, Lout)
    wfull = np.tile(np.asarray(wgt, np.float32), (1, NO))              # (Ho, Lout)
    smat = np.zeros((Lout, OUT_LANES), np.float32)
    smat[:, :NO] = np.kron(np.eye(NO, dtype=np.float32),
                           np.ones((Wo, 1), np.float32))               # segmented lane-sum

    def const_spec(shape):
        return pl.BlockSpec(shape, lambda n: (0, 0))

    out = pl.pallas_call(
        functools.partial(_cw_ssim_kernel, K=float(K)),
        out_shape=jax.ShapeDtypeStruct((num_steps, 1, OUT_LANES), jnp.float32),
        grid_spec=pltpu.PrefetchScalarGridSpec(
            num_scalar_prefetch=0,
            grid=(num_steps,),
            in_specs=[pl.BlockSpec((1, 4 * H, L), lambda n: (n, 0, 0)),
                      const_spec((3 * Ho, 3 * H)),
                      const_spec((L, Lout)),
                      const_spec((Ho, Lout)),
                      const_spec((Lout, OUT_LANES))],
            out_specs=pl.BlockSpec((1, 1, OUT_LANES), lambda n: (n, 0, 0)),
        ),
        compiler_params=pltpu.CompilerParams(
            dimension_semantics=("parallel",),        # two grid steps -> both v7x TCs
            vmem_limit_bytes=32 * 1024 * 1024,        # explicit, safe on v5e/v6e/v7x
        ),
    )(bands, jnp.asarray(lmat3), jnp.asarray(rmat), jnp.asarray(wfull), jnp.asarray(smat))

    # (steps, NO) -> (N, ORI): image-major block order within each step
    return out[:, 0, :NO].reshape(N, ORI)


# --------------------------------------------------------------------------------------
# CW_SSIM forward (matches the PyTorch module semantics)
# --------------------------------------------------------------------------------------
def _to_y_channel(img):
    # rgb (N,3,H,W) in [0,1] -> Y of YIQ scaled to [0,255], rounded (pyiqa to_y_channel)
    r, g, b = img[:, 0], img[:, 1], img[:, 2]
    y = 0.299 * r + 0.587 * g + 0.114 * b
    y = jnp.round(y * 255.0)
    return y[:, None, :, :]


def cw_ssim(X, Y, channels=1, level=4, ori=8, guardb=0, K=0.0, test_y_channel=True):
    assert X.shape == Y.shape, "Input and reference images should have the same shape"
    if test_y_channel and X.shape[1] == 3:
        X = _to_y_channel(X)
        Y = _to_y_channel(Y)
    assert X.shape[1] == 1, "SCFpyr expects single-channel images"
    del channels  # channels=1 (default) -> groups=1, win7=(1,1,7,7)

    x = X[:, 0].astype(jnp.float32)
    y = Y[:, 0].astype(jnp.float32)

    b1r, b1i = _scf_pyramid_last_band(x, level, ori)  # (ORI, N, h, w)
    b2r, b2i = _scf_pyramid_last_band(y, level, ori)

    s = np.array(b1r.shape[2:4])
    gb = int(guardb / 2 ** (level - 1))
    if gb != 0:
        # The reference builds the gaussian window from the pre-guard band size, so any
        # nonzero effective guard band is shape-inconsistent there as well.
        raise ValueError("guardb values that crop the coarsest band are not supported")

    wgt = _fspecial_gauss(s - 7 + 1, s[0] / 4.0)      # numpy (h-6, w-6)

    scores = _cw_ssim_bands_pallas(b1r, b1i, b2r, b2i, wgt, K)  # (N, ORI)
    return jnp.mean(scores, axis=1)                   # (N,)


if __name__ == "__main__":
    key = jax.random.PRNGKey(0)
    k1, k2 = jax.random.split(key)
    # level=4 requires min(H,W) >= 64 (floor(log2(min)) - 2 >= level)
    N, C, H, W = 2, 3, 64, 64
    X = jax.random.uniform(k1, (N, C, H, W), dtype=jnp.float32)
    Yimg = jnp.clip(X + 0.05 * jax.random.normal(k2, (N, C, H, W), dtype=jnp.float32), 0.0, 1.0)

    score = cw_ssim(X, Yimg)  # (N,)
    score = jax.block_until_ready(score)
    assert score.shape == (N,)
    assert bool(jnp.all(jnp.isfinite(score)))
    print("KERNEL_OK")
</pallas_src>

<mosaic_0001>
module attributes {stable_mosaic.version = 11 : i64} {
  func.func @_cw_ssim_kernel(%arg0: i32, %arg1: memref<1x32x128xf32, #tpu.memory_space<vmem>>, %arg2: memref<6x24xf32, #tpu.memory_space<vmem>>, %arg3: memref<128x32xf32, #tpu.memory_space<vmem>>, %arg4: memref<2x32xf32, #tpu.memory_space<vmem>>, %arg5: memref<32x128xf32, #tpu.memory_space<vmem>>, %arg6: memref<1x1x128xf32, #tpu.memory_space<vmem>>) attributes {dimension_semantics = [#tpu.dimension_semantics<parallel>], iteration_bounds = array<i64: 1>, scalar_prefetch = 0 : i64, scratch_operands = 0 : i64, tpu.core_type = #tpu.core_type<tc>, window_params = [{transform_indices = @transform_0, window_bounds = array<i64: 1, 32, 128>}, {pipeline_mode = #tpu.pipeline_mode<synchronous>, transform_indices = @transform_1, window_bounds = array<i64: 6, 24>}, {pipeline_mode = #tpu.pipeline_mode<synchronous>, transform_indices = @transform_2, window_bounds = array<i64: 128, 32>}, {pipeline_mode = #tpu.pipeline_mode<synchronous>, transform_indices = @transform_3, window_bounds = array<i64: 2, 32>}, {pipeline_mode = #tpu.pipeline_mode<synchronous>, transform_indices = @transform_4, window_bounds = array<i64: 32, 128>}, {transform_indices = @transform_5, window_bounds = array<i64: 1, 1, 128>}]} {
    %c0 = arith.constant 0 : index
    %c0_0 = arith.constant 0 : index
    %c0_1 = arith.constant 0 : index
    %0 = vector.load %arg1[%c0, %c0_0, %c0_1] : memref<1x32x128xf32, #tpu.memory_space<vmem>>, vector<1x32x128xf32>
    %1 = vector.shape_cast %0 : vector<1x32x128xf32> to vector<32x128xf32>
    %2 = vector.extract_strided_slice %1 {offsets = [0, 0], sizes = [8, 128], strides = [1, 1]} : vector<32x128xf32> to vector<8x128xf32>
    %3 = vector.extract_strided_slice %1 {offsets = [8, 0], sizes = [8, 128], strides = [1, 1]} : vector<32x128xf32> to vector<8x128xf32>
    %4 = vector.extract_strided_slice %1 {offsets = [16, 0], sizes = [8, 128], strides = [1, 1]} : vector<32x128xf32> to vector<8x128xf32>
    %5 = vector.extract_strided_slice %1 {offsets = [24, 0], sizes = [8, 128], strides = [1, 1]} : vector<32x128xf32> to vector<8x128xf32>
    %6 = arith.mulf %2, %4 : vector<8x128xf32>
    %7 = arith.mulf %3, %5 : vector<8x128xf32>
    %8 = arith.addf %6, %7 : vector<8x128xf32>
    %9 = arith.mulf %3, %4 : vector<8x128xf32>
    %10 = arith.mulf %2, %5 : vector<8x128xf32>
    %11 = arith.subf %9, %10 : vector<8x128xf32>
    %12 = arith.mulf %2, %2 : vector<8x128xf32>
    %13 = arith.mulf %3, %3 : vector<8x128xf32>
    %14 = arith.addf %12, %13 : vector<8x128xf32>
    %15 = arith.mulf %4, %4 : vector<8x128xf32>
    %16 = arith.addf %14, %15 : vector<8x128xf32>
    %17 = arith.mulf %5, %5 : vector<8x128xf32>
    %18 = arith.addf %16, %17 : vector<8x128xf32>
    %19 = tpu.concatenate %8, %11, %18 in 0 : vector<8x128xf32>, vector<8x128xf32>, vector<8x128xf32> -> vector<24x128xf32>
    %c0_2 = arith.constant 0 : index
    %c0_3 = arith.constant 0 : index
    %20 = vector.load %arg2[%c0_2, %c0_3] : memref<6x24xf32, #tpu.memory_space<vmem>>, vector<6x24xf32>
    %cst = arith.constant dense<0.000000e+00> : vector<6x128xf32>
    %21 = tpu.matmul %20, %19, %cst {dimension_numbers = #tpu.dot_dimension_numbers<[1], [0], [0], [1], [0, 0, 1, 1], [], []>} : vector<6x24xf32>, vector<24x128xf32>, vector<6x128xf32> -> vector<6x128xf32>
    %c0_4 = arith.constant 0 : index
    %c0_5 = arith.constant 0 : index
    %22 = vector.load %arg3[%c0_4, %c0_5] : memref<128x32xf32, #tpu.memory_space<vmem>>, vector<128x32xf32>
    %cst_6 = arith.constant dense<0.000000e+00> : vector<6x32xf32>
    %23 = tpu.matmul %21, %22, %cst_6 {dimension_numbers = #tpu.dot_dimension_numbers<[1], [0], [0], [1], [0, 0, 1, 1], [], []>} : vector<6x128xf32>, vector<128x32xf32>, vector<6x32xf32> -> vector<6x32xf32>
    %24 = vector.extract_strided_slice %23 {offsets = [0, 0], sizes = [2, 32], strides = [1, 1]} : vector<6x32xf32> to vector<2x32xf32>
    %25 = vector.extract_strided_slice %23 {offsets = [2, 0], sizes = [2, 32], strides = [1, 1]} : vector<6x32xf32> to vector<2x32xf32>
    %26 = vector.extract_strided_slice %23 {offsets = [4, 0], sizes = [2, 32], strides = [1, 1]} : vector<6x32xf32> to vector<2x32xf32>
    %27 = arith.mulf %24, %24 : vector<2x32xf32>
    %28 = arith.mulf %25, %25 : vector<2x32xf32>
    %29 = arith.addf %27, %28 : vector<2x32xf32>
    %30 = math.sqrt %29 : vector<2x32xf32>
    %cst_7 = arith.constant 0.0204081628 : f32
    %31 = vector.broadcast %cst_7 : f32 to vector<2x32xf32>
    %32 = arith.mulf %30, %31 : vector<2x32xf32>
    %cst_8 = arith.constant 0.0204081628 : f32
    %33 = vector.broadcast %cst_8 : f32 to vector<2x32xf32>
    %34 = arith.mulf %26, %33 : vector<2x32xf32>
    %cst_9 = arith.constant 0.000000e+00 : f32
    %35 = vector.broadcast %cst_9 : f32 to vector<2x32xf32>
    %36 = arith.addf %34, %35 : vector<2x32xf32>
    %cst_10 = arith.constant 2.000000e+00 : f32
    %37 = vector.broadcast %cst_10 : f32 to vector<2x32xf32>
    %38 = arith.mulf %37, %32 : vector<2x32xf32>
    %cst_11 = arith.constant 0.000000e+00 : f32
    %39 = vector.broadcast %cst_11 : f32 to vector<2x32xf32>
    %40 = arith.addf %38, %39 : vector<2x32xf32>
    %41 = arith.divf %40, %36 : vector<2x32xf32>
    %c0_12 = arith.constant 0 : index
    %c0_13 = arith.constant 0 : index
    %42 = vector.load %arg4[%c0_12, %c0_13] : memref<2x32xf32, #tpu.memory_space<vmem>>, vector<2x32xf32>
    %43 = arith.mulf %41, %42 : vector<2x32xf32>
    %cst_14 = arith.constant dense<0.000000e+00> : vector<32xf32>
    %44 = vector.multi_reduction <add>, %43, %cst_14 [0] : vector<2x32xf32> to vector<32xf32>
    %45 = vector.shape_cast %44 : vector<32xf32> to vector<1x32xf32>
    %c0_15 = arith.constant 0 : index
    %c0_16 = arith.constant 0 : index
    %46 = vector.load %arg5[%c0_15, %c0_16] : memref<32x128xf32, #tpu.memory_space<vmem>>, vector<32x128xf32>
    %cst_17 = arith.constant dense<0.000000e+00> : vector<1x128xf32>
    %47 = tpu.matmul %45, %46, %cst_17 {dimension_numbers = #tpu.dot_dimension_numbers<[1], [0], [0], [1], [0, 0, 1, 1], [], []>} : vector<1x32xf32>, vector<32x128xf32>, vector<1x128xf32> -> vector<1x128xf32>
    %48 = vector.shape_cast %47 : vector<1x128xf32> to vector<1x1x128xf32>
    %c0_18 = arith.constant 0 : index
    %c0_19 = arith.constant 0 : index
    %c0_20 = arith.constant 0 : index
    %49 = vector.load %arg6[%c0_18, %c0_19, %c0_20] : memref<1x1x128xf32, #tpu.memory_space<vmem>>, vector<1x1x128xf32>
    tpu.vector_store %arg6[%c0_18, %c0_19, %c0_20], %48 {strides = array<i32>} : memref<1x1x128xf32, #tpu.memory_space<vmem>>, vector<1x1x128xf32>,
    return
  }
  func.func @transform_0(%arg0: i32) -> (i32, i32, i32) {
    %c0_i32 = arith.constant 0 : i32
    %c0_i32_0 = arith.constant 0 : i32
    %c0_i32_1 = arith.constant 0 : i32
    return %arg0, %c0_i32, %c0_i32_0 : i32, i32, i32
  }
  func.func @transform_1(%arg0: i32) -> (i32, i32) {
    %c0_i32 = arith.constant 0 : i32
    %c0_i32_0 = arith.constant 0 : i32
    %c0_i32_1 = arith.constant 0 : i32
    return %c0_i32, %c0_i32_0 : i32, i32
  }
  func.func @transform_2(%arg0: i32) -> (i32, i32) {
    %c0_i32 = arith.constant 0 : i32
    %c0_i32_0 = arith.constant 0 : i32
    %c0_i32_1 = arith.constant 0 : i32
    return %c0_i32, %c0_i32_0 : i32, i32
  }
  func.func @transform_3(%arg0: i32) -> (i32, i32) {
    %c0_i32 = arith.constant 0 : i32
    %c0_i32_0 = arith.constant 0 : i32
    %c0_i32_1 = arith.constant 0 : i32
    return %c0_i32, %c0_i32_0 : i32, i32
  }
  func.func @transform_4(%arg0: i32) -> (i32, i32) {
    %c0_i32 = arith.constant 0 : i32
    %c0_i32_0 = arith.constant 0 : i32
    %c0_i32_1 = arith.constant 0 : i32
    return %c0_i32, %c0_i32_0 : i32, i32
  }
  func.func @transform_5(%arg0: i32) -> (i32, i32, i32) {
    %c0_i32 = arith.constant 0 : i32
    %c0_i32_0 = arith.constant 0 : i32
    %c0_i32_1 = arith.constant 0 : i32
    return %arg0, %c0_i32, %c0_i32_0 : i32, i32, i32
  }
}

</mosaic_0001>

<bundles_post_ra>
// kernel: tpu_custom_call.1
= control target key start
LH: loop header
LB: loop body
LE: loop exit
PB: predicated region body
PF: predicated region fallthrough
CT: control target
= control target key end

     0   :  { %v472_v3 = vmov 0.0|0.0   ;;  %vm473_vm0 = vmmov 0   ;;  %v474_v13 = vmov 0.0   ;;  %s610_s0 = inlined_call_operand.vmem [shape: f32[1,32,128], index: 0, kind: input, shape index: {}]   ;;  %s611_s1 = inlined_call_operand.vmem [shape: f32[6,24], index: 1, kind: input, shape index: {}]   ;;  %s612_s2 = inlined_call_operand.vmem [shape: f32[128,32], index: 2, kind: input, shape index: {}]   ;;  %s613_s3 = inlined_call_operand.vmem [shape: f32[2,32], index: 3, kind: input, shape index: {}]   ;;  %s614_s4 = inlined_call_operand.vmem [shape: f32[32,128], index: 4, kind: input, shape index: {}]   ;;  %s615_s5 = inlined_call_operand.hbm [shape: f32[1,1,128], index: 5, kind: output, shape index: {}]  }
   0x1   :  { %v21_v0 = vld [vmem:[%s610_s0] sm:$0xff]  ;;  %v22_v1 = vld [vmem:[%s610_s0 + $0x8] sm:$0xff]  ;;  %v23_v2 = vld [vmem:[%s610_s0 + $0x10] sm:$0xff]  ;;  %407 = vmatprep.subr.bf16.mxu0 %v472_v3  ;;  %358 = vmatprep.mubr.msk.f32.mxu0 %vm473_vm0, %v474_v13 }
   0x2   :  { %v24_v4 = vld [vmem:[%s610_s0 + $0x18] sm:$0xff]  ;;  %v25_v5 = vmul.f32 %v23_v2, %v21_v0  ;;  %v28_v6 = vmul.f32 %v23_v2, %v22_v1  ;;  %v31_v7 = vmul.f32 %v21_v0, %v21_v0  ;;  %v32_v8 = vmul.f32 %v22_v1, %v22_v1  ;;  %v113_v9 = vld [vmem:[%s612_s2] sm:$0xff]  ;;  %v114_v14 = vld [vmem:[%s612_s2 + $0x8] sm:$0xff]  ;;  %410 = vmatprep.subr.bf16.mxu1 %v472_v3 }
   0x3   :  { %v26_v10 = vmul.f32 %v24_v4, %v22_v1  ;;  %v29_v11 = vmul.f32 %v24_v4, %v21_v0  ;;  %v34_v12 = vmul.f32 %v23_v2, %v23_v2  ;;  %v115_v15 = vld [vmem:[%s612_s2 + $0x10] sm:$0xff]  ;;  %v116_v16 = vld [vmem:[%s612_s2 + $0x18] sm:$0xff]  ;;  %v411_v18 = vpack.c.bf16 %v114_v14, %v113_v9  ;;  %393 = vmatprep.mubr.msk.f32.mxu1 %vm473_vm0, %v474_v13  ;;  %v117_v25 = vld [vmem:[%s612_s2 + $0x20] sm:$0xff] }
   0x4   :  { %v33_v17 = vadd.f32 %v32_v8, %v31_v7  ;;  %v36_v21 = vmul.f32 %v24_v4, %v24_v4  ;;  %v414_v23 = vpack.c.bf16 %v116_v16, %v115_v15  ;;  %v118_v26 = vld [vmem:[%s612_s2 + $0x28] sm:$0xff] }
   0x5   :  { %v27_v19 = vadd.f32 %v26_v10, %v25_v5  ;;  %v30_v20 = vsub.f32 %v28_v6, %v29_v11  ;;  %412 = vmatpush3.bf16.msra.mxu1 %v411_v18 }
   0x6   :  { %v35_v22 = vadd.f32 %v34_v12, %v33_v17  ;;  %413 = vmatprep.subr.bf16.mxu1 %v472_v3 }
   0x7   :  { %v408_v24 = vpack.c.bf16 %v30_v20, %v27_v19 }
   0x8   :  { %10 = vsyncpa [#allocation3], 0  ;;  %v37_v27 = vadd.f32 %v36_v21, %v35_v22  ;;  %v417_v28 = vpack.c.bf16 %v118_v26, %v117_v25  ;;  %v38_v29 = vld [vmem:[%s611_s1] sm:$0x3f]  ;;  %vm39_vm1 = vcmask 195584   ;;  %v119_v30 = vld [vmem:[%s612_s2 + $0x30] sm:$0xff] }
   0x9   :  { %409 = vmatpush3.bf16.msra.mxu0 %v408_v24  ;;  %415 = vmatpush3.bf16.msra.mxu1 %v414_v23  ;;  %v120_v31 = vld [vmem:[%s612_s2 + $0x38] sm:$0xff]  ;;  %v121_v33 = vld [vmem:[%s612_s2 + $0x40] sm:$0xff]  ;;  %v122_v34 = vld [vmem:[%s612_s2 + $0x48] sm:$0xff]  ;;  %vm223_vm4 = vcmask 254976   ;;  %vm235_vm5 = vcmask 261120   ;;  %s475_s15 = smov [#allocation2]  }
   0xa   :  { %356 = vmatprep.subr.mxu0 %v474_v13  ;;  %416 = vmatprep.subr.bf16.mxu1 %v472_v3  ;;  %v420_v32 = vpack.c.bf16 %v120_v31, %v119_v30  ;;  %v423_v35 = vpack.c.bf16 %v122_v34, %v121_v33  ;;  %v123_v36 = vld [vmem:[%s612_s2 + $0x50] sm:$0xff]  ;;  %v124_v37 = vld [vmem:[%s612_s2 + $0x58] sm:$0xff]  ;;  %v125_v39 = vld [vmem:[%s612_s2 + $0x60] sm:$0xff]  ;;  %s316_s16 = sshll.u32 %s475_s15, 4  ;;  %s317_s16 = int_to_ptr.vmem [resolvable:$true] %s316_s16 }
   0xb   :  { %v426_v38 = vpack.c.bf16 %v124_v37, %v123_v36  ;;  %v126_v40 = vld [vmem:[%s612_s2 + $0x68] sm:$0xff]  ;;  %v127_v42 = vld [vmem:[%s612_s2 + $0x70] sm:$0xff]  ;;  %v128_v43 = vld [vmem:[%s612_s2 + $0x78] sm:$0xff]  ;;  %s448_s17 = scalar_lea.vmem %s317_s16, 16  ;;  %p453_p1 = scmp.lt.s32.totalorder %s317_s16, %s317_s16 }
   0xc   :  { %v429_v41 = vpack.c.bf16 %v126_v40, %v125_v39  ;;  %v432_v44 = vpack.c.bf16 %v128_v43, %v127_v42  ;;  %v231_v47 = vld [vmem:[%s614_s4] sm:$0xff]  ;;  %v232_v48 = vld [vmem:[%s614_s4 + $0x8] sm:$0xff]  ;;  %v233_v49 = vld [vmem:[%s614_s4 + $0x10] sm:$0xff]  ;;  %p449_p0 = scmp.ne.s32.totalorder %s317_s16, %s448_s17 }
   0xd   :  { %357 = vmatpush3.msra.mxu0 %v37_v27  ;;  %418 = vmatpush3.bf16.msra.mxu1 %v417_v28  ;;  %v435_v50 = vpack.c.bf16 %v232_v48, %v231_v47  ;;  %v234_v51 = vld [vmem:[%s614_s4 + $0x18] sm:$0xff]  ;;  %v221_v4 = vld [vmem:[%s613_s3] sm:$0x3]  ;;  %s452_s3 = scalar_lea.vmem %s317_s16, 32 }
   0xe   :  { %359 = vmatmul.mubr.msk.f32.vlgmr.msra.gmra.mrb[0].mxu0 %vm39_vm1, %v38_v29  ;;  %419 = vmatprep.subr.bf16.mxu1 %v472_v3  ;;  %v438_v52 = vpack.c.bf16 %v234_v51, %v233_v49  ;;  %p454_p2 = scmp.lt.s32.totalorder %s452_s3, %s448_s17 }
   0xf   :  { %434 = vmatprep.subr.bf16.mxu0 %v472_v3  ;;  %404 = vmatprep.mubr.msk.f32.mxu0 %vm473_vm0, %v474_v13 }
  0x10   :  { %436 = vmatpush3.bf16.msra.mxu0 %v435_v50  ;;  %p455_p3 = por %p454_p2, %p453_p1 }
  0x11   :  { %421 = vmatpush3.bf16.msra.mxu1 %v420_v32  ;;  %437 = vmatprep.subr.bf16.mxu0 %v472_v3 }
  0x12   :  { %422 = vmatprep.subr.bf16.mxu1 %v472_v3  ;;  %p456_p4 = pnand %p455_p3, %p449_p0 }
  0x14   :  { %439 = vmatpush3.bf16.msra.mxu0 %v438_v52 }
  0x15   :  { %424 = vmatpush3.bf16.msra.mxu1 %v423_v35 }
  0x16   :  { %425 = vmatprep.subr.bf16.mxu1 %v472_v3 }
  0x19   :  { %427 = vmatpush3.bf16.msra.mxu1 %v426_v38 }
  0x1a   :  { %428 = vmatprep.subr.bf16.mxu1 %v472_v3 }
  0x1d   :  { %430 = vmatpush3.bf16.msra.mxu1 %v429_v41 }
  0x1e   :  { %431 = vmatprep.subr.bf16.mxu1 %v472_v3 }
  0x21   :  { %433 = vmatpush3.bf16.msra.mxu1 %v432_v44 }
  0xe1   :  { %v109_v45 = vpop.f32.mrb[0].mxu0 }
  0xe2   :  { %v360_v46 = vpop.f32.mrb[1].mxu0  ;;  %394 = vmatmul.mubr.f32.vlgmr.msra.gmra.mrb[0].mxu1 %v109_v45 }
 0x1b5   :  { %v195_v53 = vpop.f32.mrb[0].mxu1 }
 0x1b6   :  { %v199_v54 = vmul.f32 %v195_v53, %v195_v53  ;;  %v395_v55 = vpop.f32.mrb[1].mxu1  ;;  %v212_v58 = vmul.f32 0.020408163, %v195_v53 }
 0x1b8   :  { %v201_v56 = vrot.slane %v199_v54, 2  ;;  %v217_v59 = vrot.slane %v212_v58, 4 }
 0x1ba   :  { %v203_v57 = vadd.f32 %v201_v56, %v199_v54 }
 0x1bc   :  { %444 = vrsqrt.f32 %v203_v57  ;;  %vm206_vm2 = vcmp.eq.f32.partialorder %v203_v57, inf  ;;  %v209_v62 = vand.u32 2147483648, %v203_v57  ;;  %vm208_vm3 = vcmp.eq.f32.partialorder %v203_v57, 0.0 }
 0x1bd   :  { %446 = vrcp.f32 %v217_v59 }
 0x1c6   :  { %v445_v60 = vpop.eup %444 }
 0x1c7   :  { %v205_v61 = vmul.f32 %v445_v60, %v203_v57  ;;  %v447_v3 = vpop.eup %446 }
 0x1c9   :  { %v207_v63 = vsel %vm206_vm2, %v203_v57, %v205_v61 }
 0x1ca   :  { %v210_v0 = vsel %vm208_vm3, %v209_v62, %v207_v63 }
 0x1cb   :  { %v211_v1 = vmul.f32 0.020408163, %v210_v0 }
 0x1cd   :  { %v214_v2 = vmul.f32 2.0, %v211_v1 }
 0x1cf   :  { %v220_v5 = vmul.f32 %v447_v3, %v214_v2 }
 0x1d1   :  { %v222_v6 = vmul.f32 %v221_v4, %v220_v5 }
 0x1d3   :  { %v224_v7 = vsel %vm223_vm4, %v222_v6, 0.0 }
 0x1d4   :  { %v225_v8 = vrot.slane %v224_v7, 4 }
 0x1d6   :  { %v226_v9 = vadd.f32 %v225_v8, %v224_v7 }
 0x1d8   :  { %v227_v10 = vrot.slane %v226_v9, 2 }
 0x1da   :  { %v228_v11 = vadd.f32 %v227_v10, %v226_v9 }
 0x1dc   :  { %v229_v12 = vrot.slane %v228_v11, 1 }
 0x1de   :  { %v230_v13 = vadd.f32 %v229_v12, %v228_v11 }
 0x1e0   :  { %405 = vmatmul.mubr.msk.f32.vlgmr.msra.gmra.mrb[2].mxu0 %vm235_vm5, %v230_v13 }
 0x2b3   :  { %v305_v14 = vpop.f32.mrb[2].mxu0 }
 0x2b4   :  { %309 = vst [vmem:[#allocation2] sm:$0x1] %v305_v14  ;;  %v406_v15 = vpop.f32.mrb[3].mxu0 }
 0x2b5   :  { %459 = shalt.err (!%p456_p4)
}
 0x2b6   :  { %s460_s1 = scalar_lea.hbm %s615_s5, 16 }
 0x2b7   :  { %p461_p5 = scmp.ne.s32.totalorder %s615_s5, %s460_s1  ;;  %p464_p6 = scmp.lt.u32.totalorder %s460_s1, %s615_s5 }
 0x2b9   :  { %p466_p7 = pnand %p464_p6, %p461_p5 }
 0x2bb   :  { %469 = shalt.err (!%p466_p7)
}
 0x2bc   :  { %319 = dma.vmem_to_hbm [thread:$0]  %s317_s16, 16, %s615_s5, [#allocation3]  }
 0x2bd   :  { %470 = dma.done.wait [#allocation3], 16  }
 0x2be   :  { %471 = vsyncadd [#allocation3], 4294967280 }
 0x2bf   :  { %323 = vsyncpa [#allocation3], 1 }

</bundles_post_ra>
